<compile_context>
chip_gen: v6e
topology: v6e:2x2x1
jax: 0.10.0
libtpu: 0.0.40
codegen_flags: <defaults>
</compile_context>

<pallas_src>
import jax
import jax.numpy as jnp
from jax.experimental import pallas as pl
from jax.experimental.pallas import tpu as pltpu

LANE = 128          # lane-dense padded width for all intermediates / weights
IN_F = 8            # linear1 input features
H1_F = 32           # linear1 output features (padded to LANE)
H2_F = 64           # linear2 output features (padded to LANE)
OUT_F = 128         # linear3 output features (== LANE, no padding needed)

# Row offsets of each section inside the packed parameter slab.
# Every section starts on an 8-row boundary.
W1_ROW = 0            # rows [  0,   8) : w1.T  (8  x 128)
W2_ROW = 8            # rows [  8, 136) : w2.T  (128 x 128, zero-padded rows/cols)
W3_ROW = 136          # rows [136, 264) : w3.T  (128 x 128, zero-padded rows)
B1_ROW = 264          # rows [264, 272) : b1 - 1000 in row 264, rest zero
B2_ROW = 272          # rows [272, 280) : b2 - 2000 in row 272, rest zero
B3_ROW = 280          # rows [280, 288) : b3         in row 280, rest zero
PACK_ROWS = 288


def mlp_kernel(x_ref, p_ref, o_ref):
    # Static views into the packed, VMEM-resident parameter slab (free).
    w1 = p_ref[W1_ROW:W1_ROW + IN_F, :]        # (8,   128)
    w2 = p_ref[W2_ROW:W2_ROW + LANE, :]        # (128, 128)
    w3 = p_ref[W3_ROW:W3_ROW + LANE, :]        # (128, 128)
    b1 = p_ref[B1_ROW:B1_ROW + 1, :]           # (1,   128), offset already folded
    b2 = p_ref[B2_ROW:B2_ROW + 1, :]           # (1,   128), offset already folded
    b3 = p_ref[B3_ROW:B3_ROW + 1, :]           # (1,   128)

    # linear1 (-1000 folded into b1) + relu : (1,8)@(8,128)+(1,128)
    h1 = jnp.dot(x_ref[...], w1, preferred_element_type=jnp.float32)
    h1 = jnp.maximum(h1 + b1, 0.0)

    # linear2 (-2000 folded into b2) + relu : (1,128)@(128,128)+(1,128)
    h2 = jnp.dot(h1, w2, preferred_element_type=jnp.float32)
    h2 = jnp.maximum(h2 + b2, 0.0)

    # linear3 : (1,128)@(128,128)+(1,128)
    out = jnp.dot(h2, w3, preferred_element_type=jnp.float32)
    o_ref[...] = (out + b3).astype(o_ref.dtype)


def _pad2(a, rows, cols):
    r, c = a.shape
    return jnp.pad(a, ((0, rows - r), (0, cols - c)))


def pack_params(w1, b1, w2, b2, w3, b3):
    """ONE-TIME parameter packing (call once, outside the hot path).

    Transposes PyTorch (out,in) weights to (in,out), folds the constant
    -1000 / -2000 offsets into b1 / b2, zero-pads everything to 128 lanes,
    and stacks the six buffers into a single (288, 128) f32 slab with each
    section starting on an 8-row boundary.
    """
    sections = [
        _pad2(w1.T, IN_F, LANE),                     # rows   0:  8
        _pad2(w2.T, LANE, LANE),                     # rows   8:136
        _pad2(w3.T, LANE, LANE),                     # rows 136:264
        _pad2((b1 - 1000.0)[None, :], 8, LANE),      # rows 264:272
        _pad2((b2 - 2000.0)[None, :], 8, LANE),      # rows 272:280
        _pad2(b3[None, :], 8, LANE),                 # rows 280:288
    ]
    packed = jnp.concatenate(sections, axis=0).astype(jnp.float32)
    assert packed.shape == (PACK_ROWS, LANE)
    return packed


# Advisory cost hint: 3 tiny matmuls + the packed-param DMA.
_FLOPS = 2 * 1 * IN_F * LANE + 2 * 2 * 1 * LANE * LANE          # ~67.6 KFLOP
_BYTES = PACK_ROWS * LANE * 4 + 1 * IN_F * 4 + 1 * OUT_F * 4    # ~148 KB


@jax.jit
def mlp_forward(x, params):
    """x: (1, 8) f32.  params: (288, 128) f32 slab from pack_params()."""
    vmem = pl.BlockSpec(memory_space=pltpu.MemorySpace.VMEM)
    return pl.pallas_call(
        mlp_kernel,
        out_shape=jax.ShapeDtypeStruct((x.shape[0], OUT_F), jnp.float32),
        in_specs=[vmem, vmem],
        out_specs=vmem,
        cost_estimate=pl.CostEstimate(
            flops=_FLOPS, transcendentals=0, bytes_accessed=_BYTES),
    )(x, params)


def init_linear_params(key, in_features, out_features):
    """Deterministic init mimicking torch.nn.Linear default (uniform +/- 1/sqrt(in))."""
    k_w, k_b = jax.random.split(key)
    bound = 1.0 / (in_features ** 0.5)
    w = jax.random.uniform(k_w, (out_features, in_features), jnp.float32,
                           minval=-bound, maxval=bound)
    b = jax.random.uniform(k_b, (out_features,), jnp.float32,
                           minval=-bound, maxval=bound)
    return w, b


def reference(x, w1, b1, w2, b2, w3, b3):
    v = x.reshape(1, 8)
    v = jnp.maximum(v @ w1.T + b1 - 1000.0, 0.0)
    v = jnp.maximum(v @ w2.T + b2 - 2000.0, 0.0)
    return v @ w3.T + b3


if __name__ == "__main__":
    key = jax.random.PRNGKey(0)
    k_x, k1, k2, k3 = jax.random.split(key, 4)

    # Input consistent with the module: x2 of shape (1, 8)
    x = jax.random.normal(k_x, (1, 8), jnp.float32)
    w1, b1 = init_linear_params(k1, 8, 32)
    w2, b2 = init_linear_params(k2, 32, 64)
    w3, b3 = init_linear_params(k3, 64, 128)

    # One-time parameter packing (outside the per-call critical path).
    params = pack_params(w1, b1, w2, b2, w3, b3)

    out = jax.block_until_ready(mlp_forward(x, params))
    ref = reference(x, w1, b1, w2, b2, w3, b3)
    assert out.shape == (1, 128)
    assert jnp.allclose(out, ref, atol=1e-4, rtol=1e-4)

    # Extra check with scaled input so non-trivial values survive the
    # -1000 / -2000 offsets and actually flow through all three matmuls.
    x_big = x * 5000.0
    out_big = jax.block_until_ready(mlp_forward(x_big, params))
    ref_big = reference(x_big, w1, b1, w2, b2, w3, b3)
    assert jnp.allclose(out_big, ref_big, atol=1e-2, rtol=1e-4)

    print("KERNEL_OK")
</pallas_src>

<mosaic_0001>
module attributes {stable_mosaic.version = 11 : i64} {
  func.func @mlp_kernel(%arg0: memref<1x8xf32, #tpu.memory_space<vmem>>, %arg1: memref<288x128xf32, #tpu.memory_space<vmem>>, %arg2: memref<1x128xf32, #tpu.memory_space<vmem>>) attributes {dimension_semantics = [], scalar_prefetch = 0 : i64, scratch_operands = 0 : i64, tpu.core_type = #tpu.core_type<tc>} {
    %c0 = arith.constant 0 : index
    %c0_0 = arith.constant 0 : index
    %0 = vector.load %arg1[%c0, %c0_0] : memref<288x128xf32, #tpu.memory_space<vmem>>, vector<8x128xf32>
    %c8 = arith.constant 8 : index
    %c0_1 = arith.constant 0 : index
    %1 = vector.load %arg1[%c8, %c0_1] : memref<288x128xf32, #tpu.memory_space<vmem>>, vector<128x128xf32>
    %c136 = arith.constant 136 : index
    %c0_2 = arith.constant 0 : index
    %2 = vector.load %arg1[%c136, %c0_2] : memref<288x128xf32, #tpu.memory_space<vmem>>, vector<128x128xf32>
    %c264 = arith.constant 264 : index
    %c0_3 = arith.constant 0 : index
    %3 = vector.load %arg1[%c264, %c0_3] : memref<288x128xf32, #tpu.memory_space<vmem>>, vector<1x128xf32>
    %c272 = arith.constant 272 : index
    %c0_4 = arith.constant 0 : index
    %4 = vector.load %arg1[%c272, %c0_4] : memref<288x128xf32, #tpu.memory_space<vmem>>, vector<1x128xf32>
    %c280 = arith.constant 280 : index
    %c0_5 = arith.constant 0 : index
    %5 = vector.load %arg1[%c280, %c0_5] : memref<288x128xf32, #tpu.memory_space<vmem>>, vector<1x128xf32>
    %c0_6 = arith.constant 0 : index
    %c0_7 = arith.constant 0 : index
    %6 = vector.load %arg0[%c0_6, %c0_7] : memref<1x8xf32, #tpu.memory_space<vmem>>, vector<1x8xf32>
    %cst = arith.constant dense<0.000000e+00> : vector<1x128xf32>
    %7 = tpu.matmul %6, %0, %cst {dimension_numbers = #tpu.dot_dimension_numbers<[1], [0], [0], [1], [0, 0, 1, 1], [], []>} : vector<1x8xf32>, vector<8x128xf32>, vector<1x128xf32> -> vector<1x128xf32>
    %8 = arith.addf %7, %3 : vector<1x128xf32>
    %cst_8 = arith.constant 0.000000e+00 : f32
    %9 = vector.broadcast %cst_8 : f32 to vector<1x128xf32>
    %10 = arith.maximumf %8, %9 : vector<1x128xf32>
    %cst_9 = arith.constant dense<0.000000e+00> : vector<1x128xf32>
    %11 = tpu.matmul %10, %1, %cst_9 {dimension_numbers = #tpu.dot_dimension_numbers<[1], [0], [0], [1], [0, 0, 1, 1], [], []>} : vector<1x128xf32>, vector<128x128xf32>, vector<1x128xf32> -> vector<1x128xf32>
    %12 = arith.addf %11, %4 : vector<1x128xf32>
    %cst_10 = arith.constant 0.000000e+00 : f32
    %13 = vector.broadcast %cst_10 : f32 to vector<1x128xf32>
    %14 = arith.maximumf %12, %13 : vector<1x128xf32>
    %cst_11 = arith.constant dense<0.000000e+00> : vector<1x128xf32>
    %15 = tpu.matmul %14, %2, %cst_11 {dimension_numbers = #tpu.dot_dimension_numbers<[1], [0], [0], [1], [0, 0, 1, 1], [], []>} : vector<1x128xf32>, vector<128x128xf32>, vector<1x128xf32> -> vector<1x128xf32>
    %16 = arith.addf %15, %5 : vector<1x128xf32>
    %c0_12 = arith.constant 0 : index
    %c0_13 = arith.constant 0 : index
    %17 = vector.load %arg2[%c0_12, %c0_13] : memref<1x128xf32, #tpu.memory_space<vmem>>, vector<1x128xf32>
    tpu.vector_store %arg2[%c0_12, %c0_13], %16 {strides = array<i32>} : memref<1x128xf32, #tpu.memory_space<vmem>>, vector<1x128xf32>,
    return
  }
}

</mosaic_0001>

<bundles_post_ra>
// kernel: mlp_forward.1
= control target key start
LH: loop header
LB: loop body
LE: loop exit
PB: predicated region body
PF: predicated region fallthrough
CT: control target
= control target key end

     0   :  { %7 = vsyncpa [#allocation3], 0  ;;  %s563_s0 = inlined_call_operand.hbm [shape: f32[1,8], index: 0, kind: input, shape index: {}]   ;;  %s564_s1 = inlined_call_operand.hbm [shape: f32[288,128], index: 1, kind: input, shape index: {}]   ;;  %s565_s2 = inlined_call_operand.hbm [shape: f32[1,128], index: 2, kind: output, shape index: {}]  }
   0x1   :  { %8 = vsyncpa [#allocation6], 0 }
   0x2   :  { %9 = vsyncpa [#allocation4], 0  ;;  %s493_s9 = smov [#allocation2]   ;;  %s494_s11 = smov [#allocation5]  }
   0x3   :  { %s16_s10 = sshll.u32 %s493_s9, 4  ;;  %s25_s12 = sshll.u32 %s494_s11, 4  ;;  %s17_s10 = int_to_ptr.vmem [resolvable:$true] %s16_s10  ;;  %s26_s12 = int_to_ptr.vmem [resolvable:$true] %s25_s12 }
   0x4   :  { %s435_s13 = scalar_lea.vmem %s17_s10, 16  ;;  %s439_s14 = scalar_lea.vmem %s17_s10, 32 }
   0x5   :  { %p436_p0 = scmp.ne.s32.totalorder %s17_s10, %s435_s13  ;;  %p440_p1 = scmp.lt.s32.totalorder %s17_s10, %s17_s10 }
   0x6   :  { %p441_p2 = scmp.lt.s32.totalorder %s439_s14, %s435_s13 }
   0x8   :  { %p442_p3 = por %p441_p2, %p440_p1 }
   0xa   :  { %p443_p4 = pnand %p442_p3, %p436_p0 }
   0xc   :  { %446 = shalt.err (!%p443_p4)
}
   0xd   :  { %19 = dma.hbm_to_vmem [thread:$0]  %s563_s0, 16, %s17_s10, [#allocation3]  }
   0xe   :  { %s455_s17 = scalar_lea.vmem %s26_s12, 4608  ;;  %p460_p6 = scmp.lt.s32.totalorder %s26_s12, %s26_s12 }
   0xf   :  { %p456_p5 = scmp.ne.s32.totalorder %s26_s12, %s455_s17  ;;  %p461_p7 = scmp.lt.s32.totalorder %s455_s17, %s455_s17 }
  0x11   :  { %p462_p8 = por %p461_p7, %p460_p6 }
  0x13   :  { %p463_p9 = pnand %p462_p8, %p456_p5 }
  0x15   :  { %466 = shalt.err (!%p463_p9)
}
  0x16   :  { %s495_s18 = smov 128   ;;  %s496_s19 = smov 8  }
  0x17   :  { %31 = dma.hbm_to_vmem [thread:$0]  %s564_s1, 4608, %s26_s12, [#allocation6], %s495_s18, %s495_s18, %s496_s19  }
  0x18   :  { %487 = dma.done.wait [#allocation3], 16  }
  0x19   :  { %488 = vsyncadd [#allocation3], 4294967280 }
  0x1a   :  { %489 = dma.done.wait [#allocation6], 4608  }
  0x1b   :  { %490 = vsyncadd [#allocation6], 4294962688  ;;  %v497_v0 = vmov 0.0   ;;  %vm498_vm0 = vmmov 0   ;;  %vm75_vm1 = vcmask 64512   ;;  %v38_v1 = vld [vmem:[#allocation5] sm:$0xff] }
  0x1c   :  { %345 = vmatprep.subr.mxu0 %v497_v0  ;;  %347 = vmatprep.mubr.msk.f32.mxu0 %vm498_vm0, %v497_v0  ;;  %v74_v2 = vld [vmem:[#allocation2] sm:$0x1]  ;;  %v54_v3 = vld [vmem:[#allocation5 + $0x80] sm:$0xff]  ;;  %v52_v5 = vld [vmem:[#allocation5 + $0x70] sm:$0xff]  ;;  %s499_s0 = smov [#allocation7]  }
  0x1d   :  { %350 = vmatprep.subr.mxu1 %v497_v0  ;;  %382 = vmatprep.mubr.msk.f32.mxu1 %vm498_vm0, %v497_v0  ;;  %v53_v4 = vld [vmem:[#allocation5 + $0x78] sm:$0xff]  ;;  %v51_v6 = vld [vmem:[#allocation5 + $0x68] sm:$0xff]  ;;  %v50_v7 = vld [vmem:[#allocation5 + $0x60] sm:$0xff]  ;;  %s298_s1 = sshll.u32 %s499_s0, 4  ;;  %s299_s1 = int_to_ptr.vmem [resolvable:$true] %s298_s1 }
  0x1e   :  { %346 = vmatpush3.msra.mxu0 %v38_v1  ;;  %351 = vmatpush3.msra.mxu1 %v54_v3  ;;  %v49_v8 = vld [vmem:[#allocation5 + $0x58] sm:$0xff]  ;;  %v48_v9 = vld [vmem:[#allocation5 + $0x50] sm:$0xff]  ;;  %v47_v10 = vld [vmem:[#allocation5 + $0x48] sm:$0xff]  ;;  %s467_s22 = scalar_lea.vmem %s299_s1, 16  ;;  %s471_s23 = scalar_lea.vmem %s299_s1, 32 }
  0x1f   :  { %348 = vmatmul.mubr.msk.f32.vlgmr.msra.gmra.mxu0 %vm75_vm1, %v74_v2  ;;  %352 = vmatprep.subr.mxu1 %v497_v0  ;;  %v46_v11 = vld [vmem:[#allocation5 + $0x40] sm:$0xff]  ;;  %v45_v12 = vld [vmem:[#allocation5 + $0x38] sm:$0xff]  ;;  %v44_v13 = vld [vmem:[#allocation5 + $0x30] sm:$0xff]  ;;  %p468_p10 = scmp.ne.s32.totalorder %s299_s1, %s467_s22  ;;  %p472_p11 = scmp.lt.s32.totalorder %s299_s1, %s299_s1 }
  0x20   :  { %353 = vmatpush3.msra.mxu1 %v53_v4  ;;  %385 = vmatprep.subr.mxu0 %v497_v0  ;;  %v43_v14 = vld [vmem:[#allocation5 + $0x28] sm:$0xff]  ;;  %v42_v15 = vld [vmem:[#allocation5 + $0x20] sm:$0xff]  ;;  %v41_v16 = vld [vmem:[#allocation5 + $0x18] sm:$0xff]  ;;  %p473_p12 = scmp.lt.s32.totalorder %s471_s23, %s467_s22 }
  0x21   :  { %354 = vmatprep.subr.mxu1 %v497_v0  ;;  %417 = vmatprep.mubr.msk.f32.mxu0 %vm498_vm0, %v497_v0  ;;  %v40_v17 = vld [vmem:[#allocation5 + $0x10] sm:$0xff]  ;;  %v39_v18 = vld [vmem:[#allocation5 + $0x8] sm:$0xff]  ;;  %v70_v19 = vld [vmem:[#allocation5 + $0x100] sm:$0xff] }
  0x22   :  { %355 = vmatpush3.msra.mxu1 %v52_v5  ;;  %v69_v20 = vld [vmem:[#allocation5 + $0xf8] sm:$0xff]  ;;  %386 = vmatpush3.msra.mxu0 %v70_v19  ;;  %v68_v21 = vld [vmem:[#allocation5 + $0xf0] sm:$0xff]  ;;  %v67_v22 = vld [vmem:[#allocation5 + $0xe8] sm:$0xff]  ;;  %p474_p13 = por %p473_p12, %p472_p11 }
  0x23   :  { %356 = vmatprep.subr.mxu1 %v497_v0  ;;  %387 = vmatprep.subr.mxu0 %v497_v0  ;;  %v66_v23 = vld [vmem:[#allocation5 + $0xe0] sm:$0xff]  ;;  %v65_v24 = vld [vmem:[#allocation5 + $0xd8] sm:$0xff]  ;;  %v64_v25 = vld [vmem:[#allocation5 + $0xd0] sm:$0xff] }
  0x24   :  { %357 = vmatpush3.msra.mxu1 %v51_v6  ;;  %388 = vmatpush3.msra.mxu0 %v69_v20  ;;  %v63_v26 = vld [vmem:[#allocation5 + $0xc8] sm:$0xff]  ;;  %v62_v27 = vld [vmem:[#allocation5 + $0xc0] sm:$0xff]  ;;  %v61_v28 = vld [vmem:[#allocation5 + $0xb8] sm:$0xff]  ;;  %p475_p0 = pnand %p474_p13, %p468_p10 }
  0x25   :  { %358 = vmatprep.subr.mxu1 %v497_v0  ;;  %389 = vmatprep.subr.mxu0 %v497_v0  ;;  %v60_v29 = vld [vmem:[#allocation5 + $0xb0] sm:$0xff]  ;;  %v59_v30 = vld [vmem:[#allocation5 + $0xa8] sm:$0xff]  ;;  %v58_v31 = vld [vmem:[#allocation5 + $0xa0] sm:$0xff] }
  0x26   :  { %359 = vmatpush3.msra.mxu1 %v50_v7  ;;  %390 = vmatpush3.msra.mxu0 %v68_v21  ;;  %v71_v32 = vld [vmem:[#allocation5 + $0x108] sm:$0x1]  ;;  %v57_v37 = vld [vmem:[#allocation5 + $0x98] sm:$0xff]  ;;  %v56_v38 = vld [vmem:[#allocation5 + $0x90] sm:$0xff] }
  0x27   :  { %360 = vmatprep.subr.mxu1 %v497_v0  ;;  %391 = vmatprep.subr.mxu0 %v497_v0  ;;  %v55_v39 = vld [vmem:[#allocation5 + $0x88] sm:$0xff]  ;;  %v72_v40 = vld [vmem:[#allocation5 + $0x110] sm:$0x1]  ;;  %v73_v45 = vld [vmem:[#allocation5 + $0x118] sm:$0x1] }
  0x28   :  { %361 = vmatpush3.msra.mxu1 %v49_v8  ;;  %392 = vmatpush3.msra.mxu0 %v67_v22 }
  0x29   :  { %362 = vmatprep.subr.mxu1 %v497_v0  ;;  %393 = vmatprep.subr.mxu0 %v497_v0 }
  0x2a   :  { %363 = vmatpush3.msra.mxu1 %v48_v9  ;;  %394 = vmatpush3.msra.mxu0 %v66_v23 }
  0x2b   :  { %364 = vmatprep.subr.mxu1 %v497_v0  ;;  %395 = vmatprep.subr.mxu0 %v497_v0 }
  0x2c   :  { %365 = vmatpush3.msra.mxu1 %v47_v10  ;;  %396 = vmatpush3.msra.mxu0 %v65_v24 }
  0x2d   :  { %366 = vmatprep.subr.mxu1 %v497_v0  ;;  %397 = vmatprep.subr.mxu0 %v497_v0 }
  0x2e   :  { %367 = vmatpush3.msra.mxu1 %v46_v11  ;;  %398 = vmatpush3.msra.mxu0 %v64_v25 }
  0x2f   :  { %368 = vmatprep.subr.mxu1 %v497_v0  ;;  %399 = vmatprep.subr.mxu0 %v497_v0 }
  0x30   :  { %369 = vmatpush3.msra.mxu1 %v45_v12  ;;  %400 = vmatpush3.msra.mxu0 %v63_v26 }
  0x31   :  { %370 = vmatprep.subr.mxu1 %v497_v0  ;;  %401 = vmatprep.subr.mxu0 %v497_v0 }
  0x32   :  { %371 = vmatpush3.msra.mxu1 %v44_v13  ;;  %402 = vmatpush3.msra.mxu0 %v62_v27 }
  0x33   :  { %372 = vmatprep.subr.mxu1 %v497_v0  ;;  %403 = vmatprep.subr.mxu0 %v497_v0 }
  0x34   :  { %373 = vmatpush3.msra.mxu1 %v43_v14  ;;  %404 = vmatpush3.msra.mxu0 %v61_v28 }
  0x35   :  { %374 = vmatprep.subr.mxu1 %v497_v0  ;;  %405 = vmatprep.subr.mxu0 %v497_v0 }
  0x36   :  { %375 = vmatpush3.msra.mxu1 %v42_v15  ;;  %406 = vmatpush3.msra.mxu0 %v60_v29 }
  0x37   :  { %376 = vmatprep.subr.mxu1 %v497_v0  ;;  %407 = vmatprep.subr.mxu0 %v497_v0 }
  0x38   :  { %377 = vmatpush3.msra.mxu1 %v41_v16  ;;  %408 = vmatpush3.msra.mxu0 %v59_v30 }
  0x39   :  { %378 = vmatprep.subr.mxu1 %v497_v0  ;;  %409 = vmatprep.subr.mxu0 %v497_v0 }
  0x3a   :  { %379 = vmatpush3.msra.mxu1 %v40_v17  ;;  %410 = vmatpush3.msra.mxu0 %v58_v31 }
  0x3b   :  { %380 = vmatprep.subr.mxu1 %v497_v0  ;;  %411 = vmatprep.subr.mxu0 %v497_v0 }
  0x3c   :  { %381 = vmatpush3.msra.mxu1 %v39_v18  ;;  %412 = vmatpush3.msra.mxu0 %v57_v37 }
  0x3d   :  { %413 = vmatprep.subr.mxu0 %v497_v0 }
  0x3e   :  { %414 = vmatpush3.msra.mxu0 %v56_v38 }
  0x3f   :  { %415 = vmatprep.subr.mxu0 %v497_v0 }
  0x40   :  { %416 = vmatpush3.msra.mxu0 %v55_v39 }
  0xdf   :  { %v145_v33 = vpop.f32.mrf.mxu0 }
  0xe0   :  { %v146_v34 = vadd.f32 %v145_v33, %v71_v32 }
  0xe1   :  { %v349_v35 = vpop.f32.mrf.mxu0 }
  0xe2   :  { %v149_v36 = vmax.f32 %v146_v34, 0.0 }
  0xe4   :  { %383 = vmatmul.mubr.f32.vlgmr.msra.gmra.mxu1 %v149_v36 }
 0x1a4   :  { %v216_v41 = vpop.f32.mrf.mxu1 }
 0x1a5   :  { %v217_v42 = vadd.f32 %v216_v41, %v72_v40 }
 0x1a6   :  { %v384_v43 = vpop.f32.mrf.mxu1 }
 0x1a7   :  { %v220_v44 = vmax.f32 %v217_v42, 0.0 }
 0x1a9   :  { %418 = vmatmul.mubr.f32.vlgmr.msra.gmra.mxu0 %v220_v44 }
 0x269   :  { %v287_v46 = vpop.f32.mrf.mxu0 }
 0x26a   :  { %v288_v47 = vadd.f32 %v287_v46, %v73_v45 }
 0x26b   :  { %v419_v48 = vpop.f32.mrf.mxu0 }
 0x26c   :  { %291 = vst [vmem:[#allocation7] sm:$0x1] %v288_v47 }
 0x26d   :  { %478 = shalt.err (!%p475_p0)
}
 0x26e   :  { %301 = dma.vmem_to_hbm [thread:$0]  %s299_s1, 16, %s565_s2, [#allocation4]  }
 0x26f   :  { %491 = dma.done.wait [#allocation4], 16  }
 0x270   :  { %492 = vsyncadd [#allocation4], 4294967280 }
 0x271   :  { %305 = vsyncpa [#allocation3], 1 }
 0x272   :  { %306 = vsyncpa [#allocation6], 1 }
 0x273   :  { %307 = vsyncpa [#allocation4], 1 }

</bundles_post_ra>
